<compile_context>
chip_gen: v7x
topology: tpu7x:2x2x1
jax: 0.10.0
libtpu: 0.0.40
codegen_flags: <defaults>
</compile_context>

<pallas_src>
import functools

import jax
import jax.numpy as jnp
from jax.experimental import pallas as pl
from jax.experimental.pallas import tpu as pltpu

NEG_SLOPE = 0.01  # PyTorch nn.LeakyReLU default negative_slope
LANES = 128


def _leaky_relu(x):
    return jnp.where(x >= 0, x, NEG_SLOPE * x)


def _round_up(v, mult):
    return ((v + mult - 1) // mult) * mult


# --------------------------------------------------------------------------
# Kernel 1a: lane-dense partial sums over the spatial axis (S % 128 == 0).
#   x_ref: (TM, S) -> o_ref: (TM, 128) partial sums, pure VPU adds.
#   The 128-lane finish + 1/S scale happens on the tiny slab in plain XLA.
# --------------------------------------------------------------------------
def pool_partial_kernel(x_ref, o_ref, *, n_chunks):
    acc = x_ref[:, 0:LANES]
    for q in range(1, n_chunks):
        acc = acc + x_ref[:, q * LANES:(q + 1) * LANES]
    o_ref[...] = acc


# --------------------------------------------------------------------------
# Kernel 1b: fallback full in-kernel reduce (S not a multiple of 128).
# --------------------------------------------------------------------------
def pool_sum_kernel(x_ref, o_ref, *, inv_s):
    o_ref[...] = jnp.sum(x_ref[...], axis=-1, keepdims=True) * inv_s


# --------------------------------------------------------------------------
# Kernel 2: two-layer MLP head (tiny — single full-VMEM block)
# --------------------------------------------------------------------------
def mlp_head_kernel(feat_ref, w1_ref, b1_ref, w2_ref, b2_ref, o_ref):
    h = jnp.dot(feat_ref[...], w1_ref[...],
                preferred_element_type=jnp.float32) + b1_ref[...]
    h = _leaky_relu(h)
    o_ref[...] = jnp.dot(h, w2_ref[...],
                         preferred_element_type=jnp.float32) + b2_ref[...]


def _per_buffer_budget_bytes():
    """Byte budget for one (double-buffered) input tile, generation aware."""
    try:
        cap = getattr(pltpu.get_tpu_info(), "vmem_capacity_bytes", None)
    except Exception:
        cap = None
    if cap is not None and cap > 64 * 1024 * 1024:
        return 8 * 1024 * 1024      # v5e / v6e: 128 MiB physical VMEM
    return 4 * 1024 * 1024          # v7x (64 MiB physical) or unknown: stay safe


def _choose_tm(m, s, per_buf_bytes):
    """Row-tile size by bytes; multiple of 8; >=2 grid steps when possible."""
    row_bytes = s * 4
    tm = max(8, (per_buf_bytes // max(1, row_bytes)) // 8 * 8)
    m8 = _round_up(m, 8)
    tm = min(tm, m8)
    # Give the "parallel" grid axis >=2 steps so both v7x TensorCores get work.
    if m8 >= 16 and pl.cdiv(m, tm) < 2:
        tm = max(8, (m8 // 2) // 8 * 8)
    return tm


# --------------------------------------------------------------------------
# Wrapper
# --------------------------------------------------------------------------
def head_forward(x, params):
    """x: (N, C, H, W) float32 -> (out (N, out_f), x_feat (N, C))."""
    n, c, h, w = x.shape
    w1, b1, w2, b2 = params
    assert w1.shape[0] == c, "Head requires in_f == number of channels C"
    out_f = w2.shape[1]

    s = h * w
    m = n * c
    inv_s = 1.0 / float(s)

    # glue reshape in plain JAX (contiguous merge, no copy): (N,C,H,W) -> (N*C, H*W)
    x2d = x.reshape(m, s)

    tm = _choose_tm(m, s, _per_buffer_budget_bytes())
    grid = (pl.cdiv(m, tm),)   # ragged last block is masked by Pallas (no pad copy)
    # TODO(synk): for extreme H*W (>~260k) a second "arbitrary" grid axis over S
    # with a pl.when-initialized accumulator would be needed to stay within VMEM.

    cparams = pltpu.CompilerParams(
        dimension_semantics=("parallel",),
        vmem_limit_bytes=32 * 1024 * 1024)

    if s % LANES == 0:
        # Lane-dense partial-sum path. Default double buffering; pl.Buffered(3)
        # is a cheap follow-up sweep if xprof shows DMA gaps between tiles.
        partial = pl.pallas_call(
            functools.partial(pool_partial_kernel, n_chunks=s // LANES),
            out_shape=jax.ShapeDtypeStruct((m, LANES), jnp.float32),
            grid=grid,
            in_specs=[pl.BlockSpec((tm, s), lambda i: (i, 0))],
            out_specs=pl.BlockSpec((tm, LANES), lambda i: (i, 0)),
            compiler_params=cparams,
            cost_estimate=pl.CostEstimate(
                flops=m * s, transcendentals=0,
                bytes_accessed=m * s * 4 + m * LANES * 4),
        )(x2d)
        x_feat = (jnp.sum(partial, axis=-1) * inv_s).reshape(n, c)
    else:
        pooled = pl.pallas_call(
            functools.partial(pool_sum_kernel, inv_s=inv_s),
            out_shape=jax.ShapeDtypeStruct((m, 1), jnp.float32),
            grid=grid,
            in_specs=[pl.BlockSpec((tm, s), lambda i: (i, 0))],
            out_specs=pl.BlockSpec((tm, 1), lambda i: (i, 0)),
            compiler_params=cparams,
            cost_estimate=pl.CostEstimate(
                flops=m * s, transcendentals=0,
                bytes_accessed=m * s * 4 + m * 4),
        )(x2d)
        x_feat = pooled[:, 0].reshape(n, c)

    # Tiny two-layer MLP head: single full-VMEM block (negligible next to pool).
    vmem = pl.BlockSpec(memory_space=pltpu.MemorySpace.VMEM)
    out = pl.pallas_call(
        mlp_head_kernel,
        out_shape=jax.ShapeDtypeStruct((n, out_f), jnp.float32),
        in_specs=[vmem] * 5,
        out_specs=vmem,
    )(x_feat, w1, b1, w2, b2)

    # TODO(synk): nn.Dropout(0.2) is identity at inference; training-mode dropout not implemented.
    return out, x_feat


# --------------------------------------------------------------------------
# Deterministic init (weights stored (in, out), i.e. transposed vs torch)
# --------------------------------------------------------------------------
def init_params(key, in_f, hidden_dim, out_f):
    ks = jax.random.split(key, 4)

    def lin(kw, kb, fan_in, fan_out):
        bound = 1.0 / jnp.sqrt(jnp.float32(fan_in))
        wgt = jax.random.uniform(kw, (fan_in, fan_out), jnp.float32, -bound, bound)
        bias = jax.random.uniform(kb, (1, fan_out), jnp.float32, -bound, bound)
        return wgt, bias

    w1, b1 = lin(ks[0], ks[1], in_f, hidden_dim)
    w2, b2 = lin(ks[2], ks[3], hidden_dim, out_f)
    return (w1, b1, w2, b2)


def reference_forward(x, params):
    """Pure-JAX reference mirroring the PyTorch Head module (eval mode)."""
    w1, b1, w2, b2 = params
    n = x.shape[0]
    x_feat = jnp.mean(x, axis=(2, 3)).reshape(n, -1)   # AdaptiveAvgPool2d(1).view(bs,-1)
    h = _leaky_relu(x_feat @ w1 + b1)
    out = h @ w2 + b2                                   # Dropout is identity at inference
    return out, x_feat


if __name__ == "__main__":
    N, C, H, W = 2, 4, 16, 16
    hidden_dim, out_f = 32, 8   # in_f == C == 4

    key = jax.random.PRNGKey(0)
    kx, kp = jax.random.split(key)
    x = jax.random.normal(kx, (N, C, H, W), dtype=jnp.float32)
    params = init_params(kp, C, hidden_dim, out_f)

    out, x_feat = head_forward(x, params)
    out = jax.block_until_ready(out)
    x_feat = jax.block_until_ready(x_feat)

    ref_out, ref_feat = reference_forward(x, params)
    assert out.shape == (N, out_f), out.shape
    assert x_feat.shape == (N, C), x_feat.shape
    assert jnp.allclose(x_feat, ref_feat, atol=1e-5, rtol=1e-5), (
        float(jnp.max(jnp.abs(x_feat - ref_feat)))
    )
    assert jnp.allclose(out, ref_out, atol=1e-5, rtol=1e-5), (
        float(jnp.max(jnp.abs(out - ref_out)))
    )
    print("KERNEL_OK")
</pallas_src>

<mosaic_0001>
module attributes {stable_mosaic.version = 11 : i64} {
  func.func @pool_partial_kernel(%arg0: i32, %arg1: memref<8x256xf32, #tpu.memory_space<vmem>>, %arg2: memref<8x128xf32, #tpu.memory_space<vmem>>) attributes {dimension_semantics = [#tpu.dimension_semantics<parallel>], iteration_bounds = array<i64: 1>, scalar_prefetch = 0 : i64, scratch_operands = 0 : i64, tpu.core_type = #tpu.core_type<tc>, window_params = [{transform_indices = @transform_0, window_bounds = array<i64: 8, 256>}, {transform_indices = @transform_1, window_bounds = array<i64: 8, 128>}]} {
    %c0 = arith.constant 0 : index
    %c0_0 = arith.constant 0 : index
    %0 = vector.load %arg1[%c0, %c0_0] : memref<8x256xf32, #tpu.memory_space<vmem>>, vector<8x128xf32>
    %c0_1 = arith.constant 0 : index
    %c128 = arith.constant 128 : index
    %1 = vector.load %arg1[%c0_1, %c128] : memref<8x256xf32, #tpu.memory_space<vmem>>, vector<8x128xf32>
    %2 = arith.addf %0, %1 : vector<8x128xf32>
    %c0_2 = arith.constant 0 : index
    %c0_3 = arith.constant 0 : index
    %3 = vector.load %arg2[%c0_2, %c0_3] : memref<8x128xf32, #tpu.memory_space<vmem>>, vector<8x128xf32>
    tpu.vector_store %arg2[%c0_2, %c0_3], %2 {strides = array<i32>} : memref<8x128xf32, #tpu.memory_space<vmem>>, vector<8x128xf32>,
    return
  }
  func.func @transform_0(%arg0: i32) -> (i32, i32) {
    %c0_i32 = arith.constant 0 : i32
    %c0_i32_0 = arith.constant 0 : i32
    return %arg0, %c0_i32 : i32, i32
  }
  func.func @transform_1(%arg0: i32) -> (i32, i32) {
    %c0_i32 = arith.constant 0 : i32
    %c0_i32_0 = arith.constant 0 : i32
    return %arg0, %c0_i32 : i32, i32
  }
}

</mosaic_0001>

<bundles_post_ra>
// kernel: tpu_custom_call.1
= control target key start
LH: loop header
LB: loop body
LE: loop exit
PB: predicated region body
PF: predicated region fallthrough
CT: control target
= control target key end

     0   :  { %6 = vsyncpa [#allocation3], 0  ;;  %s126_s0 = inlined_call_operand.hbm [shape: f32[8,256], index: 0, kind: input, shape index: {}]   ;;  %s127_s1 = inlined_call_operand.hbm [shape: f32[8,128], index: 1, kind: output, shape index: {}]  }
   0x1   :  { %7 = vsyncpa [#allocation4], 0  ;;  %s90_s6 = smov [#allocation2]   ;;  %s42_s10 = scalar_lea.hbm %s126_s0, 256 }
   0x2   :  { %s14_s7 = sshll.u32 %s90_s6, 4  ;;  %p43_p0 = scmp.ne.s32.totalorder %s126_s0, %s42_s10  ;;  %s15_s7 = int_to_ptr.vmem [resolvable:$true] %s14_s7 }
   0x3   :  { %p46_p1 = scmp.lt.u32.totalorder %s42_s10, %s126_s0 }
   0x5   :  { %p48_p2 = pnand %p46_p1, %p43_p0 }
   0x7   :  { %51 = shalt.err (!%p48_p2)
}
   0x8   :  { %s52_s15 = scalar_lea.vmem %s15_s7, 256  ;;  %p57_p4 = scmp.lt.s32.totalorder %s15_s7, %s15_s7 }
   0x9   :  { %p53_p3 = scmp.ne.s32.totalorder %s15_s7, %s52_s15  ;;  %p58_p5 = scmp.lt.s32.totalorder %s52_s15, %s52_s15 }
   0xb   :  { %p59_p6 = por %p58_p5, %p57_p4 }
   0xd   :  { %p60_p7 = pnand %p59_p6, %p53_p3 }
   0xf   :  { %63 = shalt.err (!%p60_p7)
}
  0x10   :  { %17 = dma.hbm_to_vmem [thread:$0]  %s126_s0, 256, %s15_s7, [#allocation3]  }
  0x11   :  { %86 = dma.done.wait [#allocation3], 256  }
  0x12   :  { %87 = vsyncadd [#allocation3], 4294967040  ;;  %s91_s18 = smov [#allocation5]   ;;  %v21_v0 = vld [vmem:[#allocation2] sm:$0xff]  ;;  %v22_v1 = vld [vmem:[#allocation2 + $0x8] sm:$0xff] }
  0x13   :  { %s31_s19 = sshll.u32 %s91_s18, 4  ;;  %v23_v2 = vadd.f32 %v22_v1, %v21_v0  ;;  %s32_s19 = int_to_ptr.vmem [resolvable:$true] %s31_s19 }
  0x14   :  { %s64_s20 = scalar_lea.vmem %s32_s19, 128  ;;  %p69_p9 = scmp.lt.s32.totalorder %s32_s19, %s32_s19 }
  0x15   :  { %24 = vst [vmem:[#allocation5] sm:$0xff] %v23_v2  ;;  %p65_p8 = scmp.ne.s32.totalorder %s32_s19, %s64_s20  ;;  %p70_p10 = scmp.lt.s32.totalorder %s64_s20, %s64_s20 }
  0x17   :  { %p71_p11 = por %p70_p10, %p69_p9 }
  0x19   :  { %p72_p12 = pnand %p71_p11, %p65_p8 }
  0x1b   :  { %75 = shalt.err (!%p72_p12)
}
  0x1c   :  { %s76_s0 = scalar_lea.hbm %s127_s1, 128 }
  0x1d   :  { %p77_p13 = scmp.ne.s32.totalorder %s127_s1, %s76_s0  ;;  %p80_p0 = scmp.lt.u32.totalorder %s76_s0, %s127_s1 }
  0x1f   :  { %p82_p1 = pnand %p80_p0, %p77_p13 }
  0x21   :  { %85 = shalt.err (!%p82_p1)
}
  0x22   :  { %34 = dma.vmem_to_hbm [thread:$0]  %s32_s19, 128, %s127_s1, [#allocation4]  }
  0x23   :  { %88 = dma.done.wait [#allocation4], 128  }
  0x24   :  { %89 = vsyncadd [#allocation4], 4294967168 }
  0x25   :  { %38 = vsyncpa [#allocation3], 1 }
  0x26   :  { %39 = vsyncpa [#allocation4], 1 }

</bundles_post_ra>
